<compile_context>
chip_gen: v7x
topology: tpu7x:2x2x1
jax: 0.10.0
libtpu: 0.0.40
codegen_flags: <defaults>
</compile_context>

<pallas_src>
import functools

import jax
import jax.numpy as jnp
from jax.experimental import pallas as pl
from jax.experimental.pallas import tpu as pltpu


def _round_up(v, m):
    return (v + m - 1) // m * m


# ----------------------------------------------------------------------------
# Pallas kernels
# ----------------------------------------------------------------------------
def _mm_bias_act_kernel(x_ref, w_ref, b_ref, o_ref, *, act):
    """One (block_m, block_n) output tile of act(x @ w + b).

    LHS/RHS arrive in bf16 (MXU fast path on v6e/v7x); accumulation and the
    bias/activation epilogue stay in f32.
    """
    acc = jnp.dot(x_ref[...], w_ref[...], preferred_element_type=jnp.float32)
    acc = acc + b_ref[...]                       # bias broadcast over rows
    if act == "relu":
        acc = jnp.maximum(acc, 0.0)
    elif act == "sigmoid":
        acc = 1.0 / (1.0 + jnp.exp(-acc))
    o_ref[...] = acc.astype(o_ref.dtype)


def matmul_bias_act(x, w, b, act="none", block_m=512):
    """act(x @ w + b) on the MXU.

    N is zero-padded to a multiple of 128 (lane-dense unmasked stores),
    K to a multiple of 8, and the (M, N) grid is tiled + marked parallel so
    the auto double-buffer pipeline / megacore split kick in at scale.
    """
    M, K = x.shape
    _, N = w.shape
    Kp = _round_up(K, 8)
    Np = _round_up(N, 128)
    bn = 128
    bm = min(_round_up(M, 8), block_m)
    Mp = _round_up(M, bm)

    xp = jnp.pad(x.astype(jnp.float32), ((0, Mp - M), (0, Kp - K))).astype(jnp.bfloat16)
    wp = jnp.pad(w.astype(jnp.float32), ((0, Kp - K), (0, Np - N))).astype(jnp.bfloat16)
    bp = jnp.pad(b.reshape(1, N).astype(jnp.float32), ((0, 0), (0, Np - N)))

    out = pl.pallas_call(
        functools.partial(_mm_bias_act_kernel, act=act),
        out_shape=jax.ShapeDtypeStruct((Mp, Np), jnp.float32),
        grid=(Mp // bm, Np // bn),
        in_specs=[
            pl.BlockSpec((bm, Kp), lambda i, j: (i, 0)),
            pl.BlockSpec((Kp, bn), lambda i, j: (0, j)),
            pl.BlockSpec((1, bn), lambda i, j: (0, j)),
        ],
        out_specs=pl.BlockSpec((bm, bn), lambda i, j: (i, j)),
        compiler_params=pltpu.CompilerParams(
            dimension_semantics=("parallel", "parallel")),
    )(xp, wp, bp)
    return out[:M, :N]


def _latent_kernel(pooled_ref, prew_ref, preb_ref, hw_ref, hb_ref, eps_ref,
                   o_ref, *, L):
    """Fused prenet 1x1-conv -> (mu | sigma) heads -> softplus -> rsample.

    Single lane-dense packed output row: [mu | sigma | z | zero-pad].
    """
    pooled = pooled_ref[...]                                           # (B, hid)
    enc = jnp.dot(pooled, prew_ref[...],
                  preferred_element_type=jnp.float32) + preb_ref[...]  # (B, L)
    heads = jnp.dot(enc, hw_ref[...],
                    preferred_element_type=jnp.float32) + hb_ref[...]  # (B, 2L)
    mu = heads[:, :L]
    s_pre = heads[:, L:2 * L]
    # numerically-stable softplus + tiny floor so sigma is strictly positive
    sigma = jnp.maximum(s_pre, 0.0) + jnp.log(1.0 + jnp.exp(-jnp.abs(s_pre)))
    sigma = jnp.maximum(sigma, 1e-12)
    # Normal(mu, sigma).rsample() == mu + sigma * eps
    z = mu + sigma * eps_ref[...]
    parts = [mu, sigma, z]
    pad = o_ref.shape[-1] - 3 * L
    if pad:
        parts.append(jnp.zeros((mu.shape[0], pad), jnp.float32))
    o_ref[...] = jnp.concatenate(parts, axis=-1)


def latent_path(h_nhwc, pre_w, pre_b, head_w, head_b, eps, L):
    """AdaptiveAvgPool2d(1) (XLA) + one fused Pallas call for the latent path."""
    B = h_nhwc.shape[0]
    hid = h_nhwc.shape[-1]
    pooled = jnp.mean(h_nhwc, axis=(1, 2)).astype(jnp.float32)        # (B, hid)
    Npack = _round_up(3 * L, 128)
    packed = pl.pallas_call(
        functools.partial(_latent_kernel, L=L),
        out_shape=jax.ShapeDtypeStruct((B, Npack), jnp.float32),
        grid=(1,),
        in_specs=[
            pl.BlockSpec((B, hid), lambda i: (0, 0)),
            pl.BlockSpec((hid, L), lambda i: (0, 0)),
            pl.BlockSpec((1, L), lambda i: (0, 0)),
            pl.BlockSpec((L, 2 * L), lambda i: (0, 0)),
            pl.BlockSpec((1, 2 * L), lambda i: (0, 0)),
            pl.BlockSpec((B, L), lambda i: (0, 0)),
        ],
        out_specs=pl.BlockSpec((B, Npack), lambda i: (0, 0)),
    )(pooled, pre_w, pre_b, head_w, head_b, eps)
    return packed[:, :L], packed[:, L:2 * L], packed[:, 2 * L:3 * L]


# ----------------------------------------------------------------------------
# Conv glue (NHWC im2col; all matmuls run inside the Pallas kernel)
# ----------------------------------------------------------------------------
def _im2col_nhwc(x, k, stride, pad):
    """Rows ordered (b, ho, wo); K ordered (kh, kw, c). Pure slices + reshape."""
    B, H, W, C = x.shape
    xp = jnp.pad(x, ((0, 0), (pad, pad), (pad, pad), (0, 0)))
    Ho = (H + 2 * pad - k) // stride + 1
    Wo = (W + 2 * pad - k) // stride + 1
    cols = [xp[:, i:i + stride * Ho:stride, j:j + stride * Wo:stride, :]
            for i in range(k) for j in range(k)]
    col = jnp.stack(cols, axis=3).reshape(B * Ho * Wo, k * k * C)
    return col, Ho, Wo


def conv2d_nhwc(x, w_mat, b, *, k, stride, pad, act):
    """x: (B,H,W,Cin) NHWC; w_mat: (k*k*Cin, N) packed with K order (kh,kw,cin)."""
    B = x.shape[0]
    col, Ho, Wo = _im2col_nhwc(x, k, stride, pad)
    out = matmul_bias_act(col, w_mat, b, act=act)
    return out.reshape(B, Ho, Wo, -1)


def conv_transpose2d_nhwc(x, w_mat, b4, cout, *, act):
    """ConvTranspose2d(k=4, stride=2, pad=1) via sub-pixel decomposition.

    Equivalent to a stride-1 3x3 conv on the UNdilated input whose N axis packs
    the 4 output phases (a, b); a depth-to-space reshape interleaves them.
    """
    B, H, W, _ = x.shape
    y = conv2d_nhwc(x, w_mat, b4, k=3, stride=1, pad=1, act=act)   # (B,H,W,4*cout)
    y = y.reshape(B, H, W, 2, 2, cout).transpose(0, 1, 3, 2, 4, 5)
    return y.reshape(B, 2 * H, 2 * W, cout)


# ----------------------------------------------------------------------------
# Weight packing (PyTorch layouts -> matmul-ready, lane/phase packed)
# ----------------------------------------------------------------------------
def _pack_conv_w(w):
    """Conv2d weight (Cout, Cin, kh, kw) -> (kh*kw*Cin, Cout)."""
    Cout, Cin, kh, kw = w.shape
    return jnp.transpose(w, (2, 3, 1, 0)).reshape(kh * kw * Cin, Cout)


def _pack_deconv_w(w):
    """ConvTranspose2d weight (Cin, Cout, 4, 4), stride=2, pad=1 ->
    (3*3*Cin, 4*Cout) for the sub-pixel 3x3 lowering; N ordered (a, b, cout)."""
    Cin, Cout, k, _ = w.shape
    assert k == 4
    w_emb = jnp.zeros((3, 3, Cin, 2, 2, Cout), w.dtype)
    for dh in (-1, 0, 1):
        for dw in (-1, 0, 1):
            for a in (0, 1):
                for b in (0, 1):
                    i = a + 1 - 2 * dh      # kernel row hit by phase a at offset dh
                    j = b + 1 - 2 * dw
                    if 0 <= i < k and 0 <= j < k:
                        w_emb = w_emb.at[dh + 1, dw + 1, :, a, b, :].set(w[:, :, i, j])
    return w_emb.reshape(9 * Cin, 4 * Cout)


def pack_params(p):
    return {
        "enc_w1m": _pack_conv_w(p["enc_w1"]), "enc_b1": p["enc_b1"],
        "enc_w2m": _pack_conv_w(p["enc_w2"]), "enc_b2": p["enc_b2"],
        # prenet 1x1 conv == linear: (L, hid, 1, 1) -> (hid, L)
        "pre_wm": p["pre_w"].reshape(p["pre_w"].shape[0], -1).T.astype(jnp.float32),
        "pre_b": p["pre_b"].reshape(1, -1).astype(jnp.float32),
        # fused mu/sigma heads: one (L, 2L) matmul; softplus applied to 2nd half
        "head_wm": jnp.concatenate([p["mu_w"].T, p["sig_w"].T], axis=1).astype(jnp.float32),
        "head_b": jnp.concatenate([p["mu_b"], p["sig_b"]]).reshape(1, -1).astype(jnp.float32),
        # decoder deconvs: sub-pixel packed; bias tiled over the 4 phases
        "dec_w1m": _pack_deconv_w(p["dec_w1"]), "dec_b1": jnp.tile(p["dec_b1"], 4),
        "dec_w2m": _pack_deconv_w(p["dec_w2"]), "dec_b2": jnp.tile(p["dec_b2"], 4),
    }


# ----------------------------------------------------------------------------
# Parameters (deterministic synthetic init, PyTorch weight layouts)
# ----------------------------------------------------------------------------
def init_params(key, in_ch, hid, latent_dim, num_latents):
    L = latent_dim * num_latents
    keys = jax.random.split(key, 14)

    def w(k, shape, scale=0.05):
        return scale * jax.random.normal(k, shape, jnp.float32)

    return {
        # Encoder (proposal_network)
        "enc_w1": w(keys[0], (hid, in_ch, 3, 3)), "enc_b1": w(keys[1], (hid,)),
        "enc_w2": w(keys[2], (hid, hid, 3, 3)),   "enc_b2": w(keys[3], (hid,)),
        # prenet: 1x1 conv after global average pool
        "pre_w": w(keys[4], (L, hid, 1, 1)),      "pre_b": w(keys[5], (L,)),
        # proposal heads (nn.Linear weight is (out, in))
        "mu_w": w(keys[6], (L, L)),               "mu_b": w(keys[7], (L,)),
        "sig_w": w(keys[8], (L, L)),              "sig_b": w(keys[9], (L,)),
        # Decoder (generative_network), ConvTranspose2d weight is (in, out, k, k)
        "dec_w1": w(keys[10], (L, hid, 4, 4)),    "dec_b1": w(keys[11], (hid,)),
        "dec_w2": w(keys[12], (hid, in_ch, 4, 4)), "dec_b2": w(keys[13], (in_ch,)),
    }


# ----------------------------------------------------------------------------
# Forward pass (mirrors VanillaVAE.forward)
# ----------------------------------------------------------------------------
def vanilla_vae_forward(packed, x, eps, latent_dim, num_latents):
    B = x.shape[0]
    L = latent_dim * num_latents
    hid = packed["dec_w1m"].shape[1] // 4
    in_ch = packed["dec_w2m"].shape[1] // 4

    x_nhwc = jnp.transpose(x, (0, 2, 3, 1))

    # proposal_network (encoder): 2x [Conv2d(k=3, s=2, p=1) + ReLU]
    h = conv2d_nhwc(x_nhwc, packed["enc_w1m"], packed["enc_b1"],
                    k=3, stride=2, pad=1, act="relu")
    h = conv2d_nhwc(h, packed["enc_w2m"], packed["enc_b2"],
                    k=3, stride=2, pad=1, act="relu")
    bh, bw = h.shape[1:3]                               # bottleneck_resolution

    # prenet + fused heads + Normal(mu, sigma).rsample() in one Pallas call
    mu, sigma, z = latent_path(h, packed["pre_wm"], packed["pre_b"],
                               packed["head_wm"], packed["head_b"],
                               eps.reshape(B, L).astype(jnp.float32), L)
    assert mu.shape[-1] == L

    # F.interpolate (nearest) from (1,1) to bottleneck resolution == broadcast
    sample = jnp.broadcast_to(z.reshape(B, 1, 1, L), (B, bh, bw, L))

    # generative_network (decoder): 2x ConvTranspose2d(k=4, s=2, p=1)
    d = conv_transpose2d_nhwc(sample, packed["dec_w1m"], packed["dec_b1"],
                              hid, act="relu")
    r = conv_transpose2d_nhwc(d, packed["dec_w2m"], packed["dec_b2"],
                              in_ch, act="sigmoid")
    recon = jnp.transpose(r, (0, 3, 1, 2))              # back to NCHW

    mu_f = mu.reshape(B * num_latents, latent_dim)
    sigma_f = sigma.reshape(B * num_latents, latent_dim)
    return recon, (mu_f, sigma_f)


# ----------------------------------------------------------------------------
# Main
# ----------------------------------------------------------------------------
if __name__ == "__main__":
    B, in_ch, H, W = 2, 4, 16, 16
    hid, latent_dim, num_latents = 32, 8, 4

    key = jax.random.PRNGKey(0)
    k_x, k_p, k_eps = jax.random.split(key, 3)

    x = jax.random.normal(k_x, (B, in_ch, H, W), jnp.float32)
    params = init_params(k_p, in_ch, hid, latent_dim, num_latents)
    packed = pack_params(params)
    eps = jax.random.normal(k_eps, (B * num_latents, latent_dim), jnp.float32)

    fwd = jax.jit(functools.partial(vanilla_vae_forward,
                                    latent_dim=latent_dim,
                                    num_latents=num_latents))
    recon, (mu, sigma) = fwd(packed, x, eps)
    jax.block_until_ready(recon)
    jax.block_until_ready(mu)
    jax.block_until_ready(sigma)

    assert recon.shape == (B, in_ch, H, W)
    assert mu.shape == (B * num_latents, latent_dim)
    assert sigma.shape == (B * num_latents, latent_dim)
    assert bool(jnp.all(sigma > 0.0))          # softplus (+floor) must be positive
    assert bool(jnp.all(recon >= 0.0)) and bool(jnp.all(recon <= 1.0))

    print("KERNEL_OK")
</pallas_src>

<mosaic_0001>
module attributes {stable_mosaic.version = 11 : i64} {
  func.func @_mm_bias_act_kernel(%arg0: i32, %arg1: i32, %arg2: memref<128x40xbf16, #tpu.memory_space<vmem>>, %arg3: memref<40x128xbf16, #tpu.memory_space<vmem>>, %arg4: memref<1x128xf32, #tpu.memory_space<vmem>>, %arg5: memref<128x128xf32, #tpu.memory_space<vmem>>) attributes {dimension_semantics = [#tpu.dimension_semantics<parallel>, #tpu.dimension_semantics<parallel>], iteration_bounds = array<i64: 1, 1>, scalar_prefetch = 0 : i64, scratch_operands = 0 : i64, tpu.core_type = #tpu.core_type<tc>, window_params = [{transform_indices = @transform_0, window_bounds = array<i64: 128, 40>}, {transform_indices = @transform_1, window_bounds = array<i64: 40, 128>}, {transform_indices = @transform_2, window_bounds = array<i64: 1, 128>}, {transform_indices = @transform_3, window_bounds = array<i64: 128, 128>}]} {
    %c0 = arith.constant 0 : index
    %c0_0 = arith.constant 0 : index
    %0 = vector.load %arg2[%c0, %c0_0] : memref<128x40xbf16, #tpu.memory_space<vmem>>, vector<128x40xbf16>
    %c0_1 = arith.constant 0 : index
    %c0_2 = arith.constant 0 : index
    %1 = vector.load %arg3[%c0_1, %c0_2] : memref<40x128xbf16, #tpu.memory_space<vmem>>, vector<40x128xbf16>
    %cst = arith.constant dense<0.000000e+00> : vector<128x128xf32>
    %2 = tpu.matmul %0, %1, %cst {dimension_numbers = #tpu.dot_dimension_numbers<[1], [0], [0], [1], [0, 0, 1, 1], [], []>} : vector<128x40xbf16>, vector<40x128xbf16>, vector<128x128xf32> -> vector<128x128xf32>
    %c0_3 = arith.constant 0 : index
    %c0_4 = arith.constant 0 : index
    %3 = vector.load %arg4[%c0_3, %c0_4] : memref<1x128xf32, #tpu.memory_space<vmem>>, vector<1x128xf32>
    %4 = vector.broadcast %3 : vector<1x128xf32> to vector<128x128xf32>
    %5 = arith.addf %2, %4 : vector<128x128xf32>
    %cst_5 = arith.constant 0.000000e+00 : f32
    %6 = vector.broadcast %cst_5 : f32 to vector<128x128xf32>
    %7 = arith.maximumf %5, %6 : vector<128x128xf32>
    %c0_6 = arith.constant 0 : index
    %c0_7 = arith.constant 0 : index
    %8 = vector.load %arg5[%c0_6, %c0_7] : memref<128x128xf32, #tpu.memory_space<vmem>>, vector<128x128xf32>
    tpu.vector_store %arg5[%c0_6, %c0_7], %7 {strides = array<i32>} : memref<128x128xf32, #tpu.memory_space<vmem>>, vector<128x128xf32>,
    return
  }
  func.func @transform_0(%arg0: i32, %arg1: i32) -> (i32, i32) {
    %c0_i32 = arith.constant 0 : i32
    %c0_i32_0 = arith.constant 0 : i32
    return %arg0, %c0_i32 : i32, i32
  }
  func.func @transform_1(%arg0: i32, %arg1: i32) -> (i32, i32) {
    %c0_i32 = arith.constant 0 : i32
    %c0_i32_0 = arith.constant 0 : i32
    return %c0_i32, %arg1 : i32, i32
  }
  func.func @transform_2(%arg0: i32, %arg1: i32) -> (i32, i32) {
    %c0_i32 = arith.constant 0 : i32
    %c0_i32_0 = arith.constant 0 : i32
    return %c0_i32, %arg1 : i32, i32
  }
  func.func @transform_3(%arg0: i32, %arg1: i32) -> (i32, i32) {
    %c0_i32 = arith.constant 0 : i32
    return %arg0, %arg1 : i32, i32
  }
}

module attributes {stable_mosaic.version = 11 : i64} {
  func.func @_mm_bias_act_kernel(%arg0: i32, %arg1: i32, %arg2: memref<32x288xbf16, #tpu.memory_space<vmem>>, %arg3: memref<288x128xbf16, #tpu.memory_space<vmem>>, %arg4: memref<1x128xf32, #tpu.memory_space<vmem>>, %arg5: memref<32x128xf32, #tpu.memory_space<vmem>>) attributes {dimension_semantics = [#tpu.dimension_semantics<parallel>, #tpu.dimension_semantics<parallel>], iteration_bounds = array<i64: 1, 1>, scalar_prefetch = 0 : i64, scratch_operands = 0 : i64, tpu.core_type = #tpu.core_type<tc>, window_params = [{transform_indices = @transform_0, window_bounds = array<i64: 32, 288>}, {transform_indices = @transform_1, window_bounds = array<i64: 288, 128>}, {transform_indices = @transform_2, window_bounds = array<i64: 1, 128>}, {transform_indices = @transform_3, window_bounds = array<i64: 32, 128>}]} {
    %c0 = arith.constant 0 : index
    %c0_0 = arith.constant 0 : index
    %0 = vector.load %arg2[%c0, %c0_0] : memref<32x288xbf16, #tpu.memory_space<vmem>>, vector<32x288xbf16>
    %c0_1 = arith.constant 0 : index
    %c0_2 = arith.constant 0 : index
    %1 = vector.load %arg3[%c0_1, %c0_2] : memref<288x128xbf16, #tpu.memory_space<vmem>>, vector<288x128xbf16>
    %cst = arith.constant dense<0.000000e+00> : vector<32x128xf32>
    %2 = tpu.matmul %0, %1, %cst {dimension_numbers = #tpu.dot_dimension_numbers<[1], [0], [0], [1], [0, 0, 1, 1], [], []>} : vector<32x288xbf16>, vector<288x128xbf16>, vector<32x128xf32> -> vector<32x128xf32>
    %c0_3 = arith.constant 0 : index
    %c0_4 = arith.constant 0 : index
    %3 = vector.load %arg4[%c0_3, %c0_4] : memref<1x128xf32, #tpu.memory_space<vmem>>, vector<1x128xf32>
    %4 = vector.broadcast %3 : vector<1x128xf32> to vector<32x128xf32>
    %5 = arith.addf %2, %4 : vector<32x128xf32>
    %cst_5 = arith.constant 0.000000e+00 : f32
    %6 = vector.broadcast %cst_5 : f32 to vector<32x128xf32>
    %7 = arith.maximumf %5, %6 : vector<32x128xf32>
    %c0_6 = arith.constant 0 : index
    %c0_7 = arith.constant 0 : index
    %8 = vector.load %arg5[%c0_6, %c0_7] : memref<32x128xf32, #tpu.memory_space<vmem>>, vector<32x128xf32>
    tpu.vector_store %arg5[%c0_6, %c0_7], %7 {strides = array<i32>} : memref<32x128xf32, #tpu.memory_space<vmem>>, vector<32x128xf32>,
    return
  }
  func.func @transform_0(%arg0: i32, %arg1: i32) -> (i32, i32) {
    %c0_i32 = arith.constant 0 : i32
    %c0_i32_0 = arith.constant 0 : i32
    return %arg0, %c0_i32 : i32, i32
  }
  func.func @transform_1(%arg0: i32, %arg1: i32) -> (i32, i32) {
    %c0_i32 = arith.constant 0 : i32
    %c0_i32_0 = arith.constant 0 : i32
    return %c0_i32, %arg1 : i32, i32
  }
  func.func @transform_2(%arg0: i32, %arg1: i32) -> (i32, i32) {
    %c0_i32 = arith.constant 0 : i32
    %c0_i32_0 = arith.constant 0 : i32
    return %c0_i32, %arg1 : i32, i32
  }
  func.func @transform_3(%arg0: i32, %arg1: i32) -> (i32, i32) {
    %c0_i32 = arith.constant 0 : i32
    return %arg0, %arg1 : i32, i32
  }
}

module attributes {stable_mosaic.version = 11 : i64} {
  func.func @_latent_kernel(%arg0: i32, %arg1: memref<2x32xf32, #tpu.memory_space<vmem>>, %arg2: memref<32x32xf32, #tpu.memory_space<vmem>>, %arg3: memref<1x32xf32, #tpu.memory_space<vmem>>, %arg4: memref<32x64xf32, #tpu.memory_space<vmem>>, %arg5: memref<1x64xf32, #tpu.memory_space<vmem>>, %arg6: memref<2x32xf32, #tpu.memory_space<vmem>>, %arg7: memref<2x128xf32, #tpu.memory_space<vmem>>) attributes {dimension_semantics = [#tpu.dimension_semantics<arbitrary>], iteration_bounds = array<i64: 1>, scalar_prefetch = 0 : i64, scratch_operands = 0 : i64, tpu.core_type = #tpu.core_type<tc>, window_params = [{pipeline_mode = #tpu.pipeline_mode<synchronous>, transform_indices = @transform_0, window_bounds = array<i64: 2, 32>}, {pipeline_mode = #tpu.pipeline_mode<synchronous>, transform_indices = @transform_1, window_bounds = array<i64: 32, 32>}, {pipeline_mode = #tpu.pipeline_mode<synchronous>, transform_indices = @transform_2, window_bounds = array<i64: 1, 32>}, {pipeline_mode = #tpu.pipeline_mode<synchronous>, transform_indices = @transform_3, window_bounds = array<i64: 32, 64>}, {pipeline_mode = #tpu.pipeline_mode<synchronous>, transform_indices = @transform_4, window_bounds = array<i64: 1, 64>}, {pipeline_mode = #tpu.pipeline_mode<synchronous>, transform_indices = @transform_5, window_bounds = array<i64: 2, 32>}, {pipeline_mode = #tpu.pipeline_mode<synchronous>, transform_indices = @transform_6, window_bounds = array<i64: 2, 128>}]} {
    %c0 = arith.constant 0 : index
    %c0_0 = arith.constant 0 : index
    %0 = vector.load %arg1[%c0, %c0_0] : memref<2x32xf32, #tpu.memory_space<vmem>>, vector<2x32xf32>
    %c0_1 = arith.constant 0 : index
    %c0_2 = arith.constant 0 : index
    %1 = vector.load %arg2[%c0_1, %c0_2] : memref<32x32xf32, #tpu.memory_space<vmem>>, vector<32x32xf32>
    %cst = arith.constant dense<0.000000e+00> : vector<2x32xf32>
    %2 = tpu.matmul %0, %1, %cst {dimension_numbers = #tpu.dot_dimension_numbers<[1], [0], [0], [1], [0, 0, 1, 1], [], []>} : vector<2x32xf32>, vector<32x32xf32>, vector<2x32xf32> -> vector<2x32xf32>
    %c0_3 = arith.constant 0 : index
    %c0_4 = arith.constant 0 : index
    %3 = vector.load %arg3[%c0_3, %c0_4] : memref<1x32xf32, #tpu.memory_space<vmem>>, vector<1x32xf32>
    %4 = vector.broadcast %3 : vector<1x32xf32> to vector<2x32xf32>
    %5 = arith.addf %2, %4 : vector<2x32xf32>
    %c0_5 = arith.constant 0 : index
    %c0_6 = arith.constant 0 : index
    %6 = vector.load %arg4[%c0_5, %c0_6] : memref<32x64xf32, #tpu.memory_space<vmem>>, vector<32x64xf32>
    %cst_7 = arith.constant dense<0.000000e+00> : vector<2x64xf32>
    %7 = tpu.matmul %5, %6, %cst_7 {dimension_numbers = #tpu.dot_dimension_numbers<[1], [0], [0], [1], [0, 0, 1, 1], [], []>} : vector<2x32xf32>, vector<32x64xf32>, vector<2x64xf32> -> vector<2x64xf32>
    %c0_8 = arith.constant 0 : index
    %c0_9 = arith.constant 0 : index
    %8 = vector.load %arg5[%c0_8, %c0_9] : memref<1x64xf32, #tpu.memory_space<vmem>>, vector<1x64xf32>
    %9 = vector.broadcast %8 : vector<1x64xf32> to vector<2x64xf32>
    %10 = arith.addf %7, %9 : vector<2x64xf32>
    %11 = vector.extract_strided_slice %10 {offsets = [0, 0], sizes = [2, 32], strides = [1, 1]} : vector<2x64xf32> to vector<2x32xf32>
    %12 = vector.extract_strided_slice %10 {offsets = [0, 32], sizes = [2, 32], strides = [1, 1]} : vector<2x64xf32> to vector<2x32xf32>
    %cst_10 = arith.constant 0.000000e+00 : f32
    %13 = vector.broadcast %cst_10 : f32 to vector<2x32xf32>
    %14 = arith.maximumf %12, %13 : vector<2x32xf32>
    %15 = math.absf %12 : vector<2x32xf32>
    %cst_11 = arith.constant 0.000000e+00 : f32
    %16 = vector.broadcast %cst_11 : f32 to vector<2x32xf32>
    %17 = arith.subf %16, %15 : vector<2x32xf32>
    %18 = math.exp %17 : vector<2x32xf32>
    %cst_12 = arith.constant 1.000000e+00 : f32
    %19 = vector.broadcast %cst_12 : f32 to vector<2x32xf32>
    %20 = arith.addf %19, %18 : vector<2x32xf32>
    %21 = math.log %20 : vector<2x32xf32>
    %22 = arith.addf %14, %21 : vector<2x32xf32>
    %cst_13 = arith.constant 9.99999996E-13 : f32
    %23 = vector.broadcast %cst_13 : f32 to vector<2x32xf32>
    %24 = arith.maximumf %22, %23 : vector<2x32xf32>
    %c0_14 = arith.constant 0 : index
    %c0_15 = arith.constant 0 : index
    %25 = vector.load %arg6[%c0_14, %c0_15] : memref<2x32xf32, #tpu.memory_space<vmem>>, vector<2x32xf32>
    %26 = arith.mulf %24, %25 : vector<2x32xf32>
    %27 = arith.addf %11, %26 : vector<2x32xf32>
    %cst_16 = arith.constant 0.000000e+00 : f32
    %28 = vector.broadcast %cst_16 : f32 to vector<2x32xf32>
    %29 = tpu.concatenate %11, %24, %27, %28 in 1 : vector<2x32xf32>, vector<2x32xf32>, vector<2x32xf32>, vector<2x32xf32> -> vector<2x128xf32>
    %c0_17 = arith.constant 0 : index
    %c0_18 = arith.constant 0 : index
    %30 = vector.load %arg7[%c0_17, %c0_18] : memref<2x128xf32, #tpu.memory_space<vmem>>, vector<2x128xf32>
    tpu.vector_store %arg7[%c0_17, %c0_18], %29 {strides = array<i32>} : memref<2x128xf32, #tpu.memory_space<vmem>>, vector<2x128xf32>,
    return
  }
  func.func @transform_0(%arg0: i32) -> (i32, i32) {
    %c0_i32 = arith.constant 0 : i32
    %c0_i32_0 = arith.constant 0 : i32
    %c0_i32_1 = arith.constant 0 : i32
    return %c0_i32, %c0_i32_0 : i32, i32
  }
  func.func @transform_1(%arg0: i32) -> (i32, i32) {
    %c0_i32 = arith.constant 0 : i32
    %c0_i32_0 = arith.constant 0 : i32
    %c0_i32_1 = arith.constant 0 : i32
    return %c0_i32, %c0_i32_0 : i32, i32
  }
  func.func @transform_2(%arg0: i32) -> (i32, i32) {
    %c0_i32 = arith.constant 0 : i32
    %c0_i32_0 = arith.constant 0 : i32
    %c0_i32_1 = arith.constant 0 : i32
    return %c0_i32, %c0_i32_0 : i32, i32
  }
  func.func @transform_3(%arg0: i32) -> (i32, i32) {
    %c0_i32 = arith.constant 0 : i32
    %c0_i32_0 = arith.constant 0 : i32
    %c0_i32_1 = arith.constant 0 : i32
    return %c0_i32, %c0_i32_0 : i32, i32
  }
  func.func @transform_4(%arg0: i32) -> (i32, i32) {
    %c0_i32 = arith.constant 0 : i32
    %c0_i32_0 = arith.constant 0 : i32
    %c0_i32_1 = arith.constant 0 : i32
    return %c0_i32, %c0_i32_0 : i32, i32
  }
  func.func @transform_5(%arg0: i32) -> (i32, i32) {
    %c0_i32 = arith.constant 0 : i32
    %c0_i32_0 = arith.constant 0 : i32
    %c0_i32_1 = arith.constant 0 : i32
    return %c0_i32, %c0_i32_0 : i32, i32
  }
  func.func @transform_6(%arg0: i32) -> (i32, i32) {
    %c0_i32 = arith.constant 0 : i32
    %c0_i32_0 = arith.constant 0 : i32
    %c0_i32_1 = arith.constant 0 : i32
    return %c0_i32, %c0_i32_0 : i32, i32
  }
}

module attributes {stable_mosaic.version = 11 : i64} {
  func.func @_mm_bias_act_kernel(%arg0: i32, %arg1: i32, %arg2: memref<128x288xbf16, #tpu.memory_space<vmem>>, %arg3: memref<288x128xbf16, #tpu.memory_space<vmem>>, %arg4: memref<1x128xf32, #tpu.memory_space<vmem>>, %arg5: memref<128x128xf32, #tpu.memory_space<vmem>>) attributes {dimension_semantics = [#tpu.dimension_semantics<parallel>, #tpu.dimension_semantics<parallel>], iteration_bounds = array<i64: 1, 1>, scalar_prefetch = 0 : i64, scratch_operands = 0 : i64, tpu.core_type = #tpu.core_type<tc>, window_params = [{transform_indices = @transform_0, window_bounds = array<i64: 128, 288>}, {transform_indices = @transform_1, window_bounds = array<i64: 288, 128>}, {transform_indices = @transform_2, window_bounds = array<i64: 1, 128>}, {transform_indices = @transform_3, window_bounds = array<i64: 128, 128>}]} {
    %c0 = arith.constant 0 : index
    %c0_0 = arith.constant 0 : index
    %0 = vector.load %arg2[%c0, %c0_0] : memref<128x288xbf16, #tpu.memory_space<vmem>>, vector<128x288xbf16>
    %c0_1 = arith.constant 0 : index
    %c0_2 = arith.constant 0 : index
    %1 = vector.load %arg3[%c0_1, %c0_2] : memref<288x128xbf16, #tpu.memory_space<vmem>>, vector<288x128xbf16>
    %cst = arith.constant dense<0.000000e+00> : vector<128x128xf32>
    %2 = tpu.matmul %0, %1, %cst {dimension_numbers = #tpu.dot_dimension_numbers<[1], [0], [0], [1], [0, 0, 1, 1], [], []>} : vector<128x288xbf16>, vector<288x128xbf16>, vector<128x128xf32> -> vector<128x128xf32>
    %c0_3 = arith.constant 0 : index
    %c0_4 = arith.constant 0 : index
    %3 = vector.load %arg4[%c0_3, %c0_4] : memref<1x128xf32, #tpu.memory_space<vmem>>, vector<1x128xf32>
    %4 = vector.broadcast %3 : vector<1x128xf32> to vector<128x128xf32>
    %5 = arith.addf %2, %4 : vector<128x128xf32>
    %cst_5 = arith.constant 0.000000e+00 : f32
    %6 = vector.broadcast %cst_5 : f32 to vector<128x128xf32>
    %7 = arith.subf %6, %5 : vector<128x128xf32>
    %8 = math.exp %7 : vector<128x128xf32>
    %cst_6 = arith.constant 1.000000e+00 : f32
    %9 = vector.broadcast %cst_6 : f32 to vector<128x128xf32>
    %10 = arith.addf %9, %8 : vector<128x128xf32>
    %cst_7 = arith.constant 1.000000e+00 : f32
    %11 = vector.broadcast %cst_7 : f32 to vector<128x128xf32>
    %12 = arith.divf %11, %10 : vector<128x128xf32>
    %c0_8 = arith.constant 0 : index
    %c0_9 = arith.constant 0 : index
    %13 = vector.load %arg5[%c0_8, %c0_9] : memref<128x128xf32, #tpu.memory_space<vmem>>, vector<128x128xf32>
    tpu.vector_store %arg5[%c0_8, %c0_9], %12 {strides = array<i32>} : memref<128x128xf32, #tpu.memory_space<vmem>>, vector<128x128xf32>,
    return
  }
  func.func @transform_0(%arg0: i32, %arg1: i32) -> (i32, i32) {
    %c0_i32 = arith.constant 0 : i32
    %c0_i32_0 = arith.constant 0 : i32
    return %arg0, %c0_i32 : i32, i32
  }
  func.func @transform_1(%arg0: i32, %arg1: i32) -> (i32, i32) {
    %c0_i32 = arith.constant 0 : i32
    %c0_i32_0 = arith.constant 0 : i32
    return %c0_i32, %arg1 : i32, i32
  }
  func.func @transform_2(%arg0: i32, %arg1: i32) -> (i32, i32) {
    %c0_i32 = arith.constant 0 : i32
    %c0_i32_0 = arith.constant 0 : i32
    return %c0_i32, %arg1 : i32, i32
  }
  func.func @transform_3(%arg0: i32, %arg1: i32) -> (i32, i32) {
    %c0_i32 = arith.constant 0 : i32
    return %arg0, %arg1 : i32, i32
  }
}

</mosaic_0001>

<bundles_post_ra>
// kernel: vanilla_vae_forward.5
= control target key start
LH: loop header
LB: loop body
LE: loop exit
PB: predicated region body
PF: predicated region fallthrough
CT: control target
= control target key end

     0   :  { %vm98_vm0 = vcmask 326656   ;;  %vm123_vm1 = vcmask 1043456   ;;  %s444_s1 = inlined_call_operand.vmem [shape: bf16[40,128], index: 1, kind: input, shape index: {}]   ;;  %s445_s0 = inlined_call_operand.vmem [shape: bf16[128,40], index: 0, kind: input, shape index: {}]   ;;  %s446_s2 = inlined_call_operand.vmem [shape: f32[1,128], index: 2, kind: input, shape index: {}]   ;;  %s447_s3 = inlined_call_operand.vmem [shape: f32[128,128], index: 3, kind: output, shape index: {}]  }
   0x1   :  { %v321_v0 = vld [vmem:[%s444_s1] sm:$0xff]   ;;  %v322_v1 = vld [vmem:[%s444_s1 + $0x8] sm:$0xff]   ;;  %v323_v2 = vld [vmem:[%s444_s1 + $0x10] ss:$0 sps:$4 sm:$0xff]  }
   0x2   :  { %291 = vmatprep.subr.bf16.mxu0 %v321_v0  ;;  %313 = vmatprep.subr.bf16.mxu1 %v321_v0  ;;  %v324_v3 = vld [vmem:[%s445_s0] sm:$0xff]   ;;  %v125_v5 = vsel %vm123_vm1, %v323_v2, 0  ;;  %v326_v6 = vld [vmem:[%s445_s0 + $0x8] sm:$0xff]   ;;  %v328_v8 = vld [vmem:[%s445_s0 + $0x10] sm:$0xff]  }
   0x3   :  { %292 = vmatpush3.bf16.msra.mxu0 %v321_v0  ;;  %316 = vmatpush3.bf16.msra.mxu1 %v321_v0  ;;  %v325_v4 = vld [vmem:[%s445_s0 + $0x20] sm:$0xff]   ;;  %v327_v7 = vld [vmem:[%s445_s0 + $0x28] sm:$0xff]   ;;  %v329_v9 = vld [vmem:[%s445_s0 + $0x30] sm:$0xff]  }
   0x4   :  { %293 = vmatprep.subr.bf16.mxu0 %v322_v1  ;;  %314 = vmatprep.subr.bf16.mxu1 %v322_v1  ;;  %v330_v10 = vld [vmem:[%s445_s0 + $0x18] sm:$0xff]   ;;  %v260_v12 = vld [vmem:[%s446_s2] ss:$0 sm:$0xff] }
   0x5   :  { %297 = vmatprep.mubr.msk.bf16.mxu0 %vm98_vm0, %v324_v3  ;;  %305 = vmatprep.mubr.msk.bf16.mxu1 %vm98_vm0, %v325_v4  ;;  %v331_v11 = vld [vmem:[%s445_s0 + $0x38] sm:$0xff]  }
   0x7   :  { %294 = vmatpush3.bf16.msra.mxu0 %v322_v1  ;;  %317 = vmatpush3.bf16.msra.mxu1 %v322_v1 }
   0x8   :  { %319 = vmatprep.subr.msk.bf16.mxu0 %vm123_vm1, %v323_v2  ;;  %320 = vmatprep.subr.msk.bf16.mxu1 %vm123_vm1, %v323_v2 }
   0xb   :  { %296 = vmatpush3.bf16.msra.mxu0 %v125_v5  ;;  %318 = vmatpush3.bf16.msra.mxu1 %v125_v5 }
   0xe   :  { %298 = vmatmul.mubr.msk.bf16.vlgmr.msra.gmra.mrb[0].mxu0 %vm98_vm0, %v326_v6  ;;  %306 = vmatmul.mubr.msk.bf16.vlgmr.msra.gmra.mrb[0].mxu1 %vm98_vm0, %v327_v7 }
   0xf   :  { %301 = vmatprep.mubr.msk.bf16.mxu0 %vm98_vm0, %v328_v8  ;;  %309 = vmatprep.mubr.msk.bf16.mxu1 %vm98_vm0, %v329_v9 }
  0x16   :  { %302 = vmatmul.mubr.msk.bf16.gmra.mrb[4].mxu0 %vm98_vm0, %v330_v10  ;;  %310 = vmatmul.mubr.msk.bf16.gmra.mrb[4].mxu1 %vm98_vm0, %v331_v11 }
  0xe1   :  { %v299_v13 = vpop.f32.mrb[0].mxu0  ;;  %v307_v14 = vpop.f32.mrb[0].mxu1 }
  0xe2   :  { %v170_v15 = vadd.f32 %v299_v13, %v260_v12  ;;  %v202_v16 = vadd.f32 %v307_v14, %v260_v12  ;;  %v161_v17 = vpop.f32.mrb[1].mxu0  ;;  %v193_v18 = vpop.f32.mrb[1].mxu1 }
  0xe3   :  { %v162_v19 = vadd.f32 %v260_v12, %v161_v17  ;;  %v194_v20 = vadd.f32 %v260_v12, %v193_v18  ;;  %v300_v21 = vpop.f32.mrb[2].mxu0  ;;  %v308_v22 = vpop.f32.mrb[2].mxu1 }
  0xe4   :  { %v226_v23 = vmax.f32 %v170_v15, 0.0  ;;  %v234_v24 = vmax.f32 %v202_v16, 0.0  ;;  %v173_v25 = vadd.f32 %v300_v21, %v260_v12  ;;  %v205_v26 = vadd.f32 %v308_v22, %v260_v12  ;;  %v164_v27 = vpop.f32.mrb[3].mxu0  ;;  %v196_v28 = vpop.f32.mrb[3].mxu1 }
  0xe5   :  { %v224_v29 = vmax.f32 %v162_v19, 0.0  ;;  %v232_v30 = vmax.f32 %v194_v20, 0.0  ;;  %v165_v31 = vadd.f32 %v260_v12, %v164_v27  ;;  %v197_v32 = vadd.f32 %v260_v12, %v196_v28 }
  0xe6   :  { %242 = vst [vmem:[%s447_s3 + $0x10] sm:$0xff] %v226_v23  ;;  %250 = vst [vmem:[%s447_s3 + $0x50] sm:$0xff] %v234_v24  ;;  %v227_v33 = vmax.f32 %v173_v25, 0.0  ;;  %v235_v34 = vmax.f32 %v205_v26, 0.0 }
  0xe7   :  { %240 = vst [vmem:[%s447_s3] sm:$0xff] %v224_v29  ;;  %248 = vst [vmem:[%s447_s3 + $0x40] sm:$0xff] %v232_v30  ;;  %v225_v35 = vmax.f32 %v165_v31, 0.0  ;;  %v233_v36 = vmax.f32 %v197_v32, 0.0 }
  0xe8   :  { %243 = vst [vmem:[%s447_s3 + $0x18] sm:$0xff] %v227_v33  ;;  %251 = vst [vmem:[%s447_s3 + $0x58] sm:$0xff] %v235_v34 }
  0xe9   :  { %241 = vst [vmem:[%s447_s3 + $0x8] sm:$0xff] %v225_v35  ;;  %249 = vst [vmem:[%s447_s3 + $0x48] sm:$0xff] %v233_v36  ;;  %v303_v37 = vpop.f32.mrb[4].mxu0  ;;  %v311_v38 = vpop.f32.mrb[4].mxu1 }
  0xea   :  { %v186_v39 = vadd.f32 %v303_v37, %v260_v12  ;;  %v218_v40 = vadd.f32 %v311_v38, %v260_v12  ;;  %v177_v41 = vpop.f32.mrb[5].mxu0  ;;  %v209_v42 = vpop.f32.mrb[5].mxu1 }
  0xeb   :  { %v178_v43 = vadd.f32 %v260_v12, %v177_v41  ;;  %v210_v44 = vadd.f32 %v260_v12, %v209_v42  ;;  %v304_v45 = vpop.f32.mrb[6].mxu0  ;;  %v312_v46 = vpop.f32.mrb[6].mxu1 }
  0xec   :  { %v230_v47 = vmax.f32 %v186_v39, 0.0  ;;  %v238_v48 = vmax.f32 %v218_v40, 0.0  ;;  %v189_v49 = vadd.f32 %v304_v45, %v260_v12  ;;  %v221_v50 = vadd.f32 %v312_v46, %v260_v12  ;;  %v180_v51 = vpop.f32.mrb[7].mxu0  ;;  %v212_v52 = vpop.f32.mrb[7].mxu1 }
  0xed   :  { %v228_v53 = vmax.f32 %v178_v43, 0.0  ;;  %v236_v54 = vmax.f32 %v210_v44, 0.0  ;;  %v181_v55 = vadd.f32 %v260_v12, %v180_v51  ;;  %v213_v56 = vadd.f32 %v260_v12, %v212_v52 }
  0xee   :  { %246 = vst [vmem:[%s447_s3 + $0x30] sm:$0xff] %v230_v47  ;;  %254 = vst [vmem:[%s447_s3 + $0x70] sm:$0xff] %v238_v48  ;;  %v231_v57 = vmax.f32 %v189_v49, 0.0  ;;  %v239_v58 = vmax.f32 %v221_v50, 0.0 }
  0xef   :  { %244 = vst [vmem:[%s447_s3 + $0x20] sm:$0xff] %v228_v53  ;;  %252 = vst [vmem:[%s447_s3 + $0x60] sm:$0xff] %v236_v54  ;;  %v229_v59 = vmax.f32 %v181_v55, 0.0  ;;  %v237_v60 = vmax.f32 %v213_v56, 0.0 }
  0xf0   :  { %247 = vst [vmem:[%s447_s3 + $0x38] sm:$0xff] %v231_v57  ;;  %255 = vst [vmem:[%s447_s3 + $0x78] sm:$0xff] %v239_v58 }
  0xf1   :  { %245 = vst [vmem:[%s447_s3 + $0x28] sm:$0xff] %v229_v59  ;;  %253 = vst [vmem:[%s447_s3 + $0x68] sm:$0xff] %v237_v60 }

// kernel: vanilla_vae_forward.6
= control target key start
LH: loop header
LB: loop body
LE: loop exit
PB: predicated region body
PF: predicated region fallthrough
CT: control target
= control target key end

     0   :  { %vm204_vm0 = vcmask 261120   ;;  %s521_s1 = inlined_call_operand.vmem [shape: bf16[288,128], index: 1, kind: input, shape index: {}]   ;;  %s522_s0 = inlined_call_operand.vmem [shape: bf16[32,288], index: 0, kind: input, shape index: {}]   ;;  %s523_s2 = inlined_call_operand.vmem [shape: f32[1,128], index: 2, kind: input, shape index: {}]   ;;  %s524_s3 = inlined_call_operand.vmem [shape: f32[32,128], index: 3, kind: output, shape index: {}]  }
   0x1   :  { %v388_v0 = vld [vmem:[%s521_s1 + $0x40] sm:$0xff]   ;;  %v390_v2 = vld [vmem:[%s521_s1 + $0x48] sm:$0xff]   ;;  %v392_v4 = vld [vmem:[%s521_s1 + $0x50] sm:$0xff]  }
   0x2   :  { %v389_v1 = vld [vmem:[%s521_s1] sm:$0xff]   ;;  %348 = vmatprep.subr.bf16.mxu0 %v388_v0  ;;  %v391_v3 = vld [vmem:[%s521_s1 + $0x8] sm:$0xff]   ;;  %v393_v5 = vld [vmem:[%s521_s1 + $0x10] sm:$0xff]  }
   0x3   :  { %349 = vmatpush3.bf16.msra.mxu0 %v389_v1  ;;  %v394_v6 = vld [vmem:[%s521_s1 + $0x58] sm:$0xff]   ;;  %v396_v8 = vld [vmem:[%s521_s1 + $0x60] sm:$0xff]   ;;  %v398_v11 = vld [vmem:[%s521_s1 + $0x68] sm:$0xff]  }
   0x4   :  { %350 = vmatprep.subr.bf16.mxu0 %v390_v2  ;;  %v395_v7 = vld [vmem:[%s521_s1 + $0x18] sm:$0xff]   ;;  %v397_v9 = vld [vmem:[%s521_s1 + $0x20] sm:$0xff]   ;;  %v399_v12 = vld [vmem:[%s521_s1 + $0x28] sm:$0xff]  }
   0x5   :  { %v403_v10 = vld [vmem:[%s521_s1 + $0x80] sm:$0xff]   ;;  %v400_v13 = vld [vmem:[%s521_s1 + $0x70] sm:$0xff]   ;;  %v408_v15 = vld [vmem:[%s521_s1 + $0x88] sm:$0xff]  }
   0x6   :  { %380 = vmatprep.subr.bf16.mxu1 %v403_v10  ;;  %v407_v14 = vld [vmem:[%s522_s0 + $0x4] ss:$12 sps:$4 sm:$0xff]   ;;  %v409_v16 = vld [vmem:[%s522_s0 + $0x8] ss:$12 sps:$4 sm:$0xff]   ;;  %v410_v17 = vld [vmem:[%s522_s0 + $0x20] ss:$12 sps:$4 sm:$0xff]  }
   0x7   :  { %351 = vmatpush3.bf16.msra.mxu0 %v391_v3  ;;  %381 = vmatpush3.bf16.msra.mxu1 %v403_v10  ;;  %v401_v18 = vld [vmem:[%s521_s1 + $0x30] sm:$0xff]   ;;  %v402_v19 = vld [vmem:[%s521_s1 + $0x78] sm:$0xff]   ;;  %v405_v21 = vld [vmem:[%s522_s0] ss:$12 sps:$4 sm:$0xff]  }
   0x8   :  { %352 = vmatprep.subr.bf16.mxu0 %v392_v4  ;;  %243 = vmatprep.mubr.bf16.mxu0 %v407_v14  ;;  %v404_v20 = vld [vmem:[%s521_s1 + $0x38] sm:$0xff]   ;;  %v321_v30 = vld [vmem:[%s523_s2] ss:$0 sm:$0xff] }
   0x9   :  { %382 = vmatprep.subr.bf16.mxu1 %v408_v15  ;;  %384 = vmatprep.mubr.msk.bf16.mxu1 %vm204_vm0, %v409_v16  ;;  %v411_v22 = vld [vmem:[%s522_s0 + $0x1c] ss:$12 sps:$4 sm:$0xff]   ;;  %v413_v23 = vld [vmem:[%s522_s0 + $0x18] ss:$12 sps:$4 sm:$0xff]  }
   0xb   :  { %353 = vmatpush3.bf16.msra.mxu0 %v393_v5  ;;  %383 = vmatpush3.bf16.msra.mxu1 %v408_v15 }
   0xc   :  { %354 = vmatprep.subr.bf16.mxu0 %v394_v6 }
   0xe   :  { %385 = vmatmul.mubr.msk.bf16.vlgmr.msra.gmra.mrb[0].mxu1 %vm204_vm0, %v410_v17 }
   0xf   :  { %355 = vmatpush3.bf16.msra.mxu0 %v395_v7 }
  0x10   :  { %356 = vmatprep.subr.bf16.mxu0 %v396_v8 }
  0x13   :  { %357 = vmatpush3.bf16.msra.mxu0 %v397_v9 }
  0x14   :  { %358 = vmatprep.subr.bf16.mxu0 %v398_v11 }
  0x17   :  { %359 = vmatpush3.bf16.msra.mxu0 %v399_v12 }
  0x18   :  { %360 = vmatprep.subr.bf16.mxu0 %v400_v13 }
  0x1b   :  { %361 = vmatpush3.bf16.msra.mxu0 %v401_v18 }
  0x1c   :  { %362 = vmatprep.subr.bf16.mxu0 %v402_v19 }
  0x1f   :  { %363 = vmatpush3.bf16.msra.mxu0 %v404_v20 }
  0x22   :  { %244 = vmatmul.mubr.bf16.vlgmr.msra.gmra.mrb[0].mxu0 %v405_v21 }
  0x23   :  { %251 = vmatprep.mubr.bf16.mxu0 %v411_v22 }
  0x2a   :  { %252 = vmatmul.mubr.bf16.gmra.mrb[4].mxu0 %v413_v23 }
  0xe1   :  { %v386_v24 = vpop.f32.mrb[0].mxu1 }
  0xe2   :  { %v294_v25 = vpop.f32.mrb[1].mxu1 }
  0xe3   :  { %v387_v26 = vpop.f32.mrb[2].mxu1 }
  0xe4   :  { %v297_v27 = vpop.f32.mrb[3].mxu1 }
  0xf5   :  { %v364_v28 = vpop.f32.mrb[0].mxu0 }
  0xf6   :  { %v365_v29 = vpop.f32.mrb[1].mxu0 }
  0xf7   :  { %v366_v31 = vadd.f32 %v365_v29, %v364_v28  ;;  %v367_v32 = vpop.f32.mrb[2].mxu0 }
  0xf8   :  { %v368_v33 = vpop.f32.mrb[3].mxu0 }
  0xf9   :  { %v369_v34 = vadd.f32 %v368_v33, %v367_v32  ;;  %v246_v35 = vadd.f32 %v366_v31, %v321_v30 }
  0xfb   :  { %v295_v36 = vadd.f32 %v294_v25, %v246_v35  ;;  %v249_v37 = vadd.f32 %v369_v34, %v321_v30 }
  0xfd   :  { %v309_v38 = vmax.f32 %v295_v36, 0.0  ;;  %v298_v39 = vadd.f32 %v297_v27, %v249_v37  ;;  %v370_v40 = vpop.f32.mrb[4].mxu0 }
  0xfe   :  { %v371_v41 = vpop.f32.mrb[5].mxu0 }
  0xff   :  { %313 = vst [vmem:[%s524_s3] sm:$0xff] %v309_v38  ;;  %v310_v42 = vmax.f32 %v298_v39, 0.0  ;;  %v372_v43 = vadd.f32 %v371_v41, %v370_v40  ;;  %v373_v44 = vpop.f32.mrb[6].mxu0 }
 0x100   :  { %v374_v45 = vpop.f32.mrb[7].mxu0 }
 0x101   :  { %314 = vst [vmem:[%s524_s3 + $0x8] sm:$0xff] %v310_v42  ;;  %v254_v46 = vadd.f32 %v372_v43, %v321_v30  ;;  %v375_v47 = vadd.f32 %v374_v45, %v373_v44 }
 0x103   :  { %v303_v48 = vadd.f32 %v386_v24, %v254_v46  ;;  %v257_v49 = vadd.f32 %v375_v47, %v321_v30 }
 0x105   :  { %v311_v50 = vmax.f32 %v303_v48, 0.0  ;;  %v306_v51 = vadd.f32 %v387_v26, %v257_v49 }
 0x107   :  { %315 = vst [vmem:[%s524_s3 + $0x10] sm:$0xff] %v311_v50  ;;  %v312_v52 = vmax.f32 %v306_v51, 0.0 }
 0x109   :  { %316 = vst [vmem:[%s524_s3 + $0x18] sm:$0xff] %v312_v52 }

// kernel: vanilla_vae_forward.7
= control target key start
LH: loop header
LB: loop body
LE: loop exit
PB: predicated region body
PF: predicated region fallthrough
CT: control target
= control target key end

     0   :  { %v286_v0 = vmov 0.0|0.0   ;;  %vm287_vm0 = vmmov 0   ;;  %v288_v4 = vmov 0.0   ;;  %vm35_vm1 = vcmask 261120   ;;  %s289_s16 = smov 32   ;;  %s369_s1 = inlined_call_operand.vmem [shape: f32[32,32], index: 1, kind: input, shape index: {}]   ;;  %s370_s3 = inlined_call_operand.vmem [shape: f32[32,64], index: 3, kind: input, shape index: {}]   ;;  %s371_s0 = inlined_call_operand.vmem [shape: f32[2,32], index: 0, kind: input, shape index: {}]   ;;  %s372_s5 = inlined_call_operand.vmem [shape: f32[2,32], index: 5, kind: input, shape index: {}]   ;;  %s373_s2 = inlined_call_operand.vmem [shape: f32[1,32], index: 2, kind: input, shape index: {}]   ;;  %s374_s4 = inlined_call_operand.vmem [shape: f32[1,64], index: 4, kind: input, shape index: {}]   ;;  %s375_s6 = inlined_call_operand.vmem [shape: f32[2,128], index: 6, kind: output, shape index: {}]  }
   0x1   :  { %264 = vmatprep.subr.bf16.mxu0 %v286_v0  ;;  %v24_v1 = vld [vmem:[%s369_s1] sm:$0xff]  ;;  %v25_v2 = vld [vmem:[%s369_s1 + $0x8] sm:$0xff]  ;;  %v26_v3 = vld [vmem:[%s369_s1 + $0x10] sm:$0xff]  ;;  %250 = vmatprep.mubr.msk.f32.mxu0 %vm287_vm0, %v288_v4  ;;  %vm219_vm2 = vcmask 523264   ;;  %vm221_vm3 = vcmask 785408  }
   0x2   :  { %v265_v5 = vpack.c.bf16 %v25_v2, %v24_v1  ;;  %v27_v6 = vld [vmem:[%s369_s1 + $0x18] sm:$0xff]  ;;  %270 = vmatprep.subr.bf16.mxu1 %v286_v0  ;;  %v109_v7 = vld [vmem:[%s370_s3] sm:$0xff]  ;;  %261 = vmatprep.mubr.msk.f32.mxu1 %vm287_vm0, %v288_v4  ;;  %v110_v8 = vld [vmem:[%s370_s3 + $0x8] sm:$0xff] }
   0x3   :  { %v268_v9 = vpack.c.bf16 %v27_v6, %v26_v3  ;;  %v271_v10 = vpack.c.bf16 %v110_v8, %v109_v7  ;;  %v23_v11 = vld [vmem:[%s371_s0] sm:$0x3]  ;;  %v111_v12 = vld [vmem:[%s370_s3 + $0x10] sm:$0xff]  ;;  %v112_v13 = vld [vmem:[%s370_s3 + $0x18] sm:$0xff]  ;;  %s291_s3 = smov 64  }
   0x4   :  { %266 = vmatpush3.bf16.msra.mxu0 %v265_v5  ;;  %v274_v14 = vpack.c.bf16 %v112_v13, %v111_v12  ;;  %v203_v15 = vld [vmem:[%s372_s5] sm:$0x3] }
   0x5   :  { %267 = vmatprep.subr.bf16.mxu0 %v286_v0  ;;  %272 = vmatpush3.bf16.msra.mxu1 %v271_v10  ;;  %v228_v16 = vld [vmem:[%s373_s2] ss:$0 sm:$0xff]  ;;  %s290_s2 = smov 96  }
   0x6   :  { %273 = vmatprep.subr.bf16.mxu1 %v286_v0  ;;  %205 = vrot.lane.b32.xlu0 %v203_v15, %s289_s16  ;;  %v230_v20 = vld [vmem:[%s374_s4] ss:$0 sm:$0xff] }
   0x8   :  { %269 = vmatpush3.bf16.msra.mxu0 %v268_v9 }
   0x9   :  { %275 = vmatpush3.bf16.msra.mxu1 %v274_v14 }
   0xb   :  { %251 = vmatmul.mubr.msk.f32.vlgmr.msra.gmra.mrb[0].mxu0 %vm35_vm1, %v23_v11 }
  0x78   :  { %v206_v33 = vpop.permute.xlu0 %205 }
  0xde   :  { %v105_v17 = vpop.f32.mrb[0].mxu0 }
  0xdf   :  { %v106_v18 = vadd.f32 %v228_v16, %v105_v17  ;;  %v252_v19 = vpop.f32.mrb[1].mxu0 }
  0xe1   :  { %262 = vmatmul.mubr.msk.f32.vlgmr.msra.gmra.mrb[0].mxu1 %vm35_vm1, %v106_v18 }
 0x1b4   :  { %v189_v21 = vpop.f32.mrb[0].mxu1 }
 0x1b5   :  { %v190_v22 = vadd.f32 %v230_v20, %v189_v21  ;;  %v263_v23 = vpop.f32.mrb[1].mxu1 }
 0x1b7   :  { %v194_v24 = vand.u32 2147483647, %v190_v22  ;;  %v193_v30 = vmax.f32 %v190_v22, 0.0 }
 0x1b9   :  { %v195_v25 = vsub.f32 0.0, %v194_v24 }
 0x1bb   :  { %v196_v26 = vmul.f32 1.442695, %v195_v25 }
 0x1bd   :  { %282 = vpow2.f32 %v196_v26 }
 0x1c7   :  { %v283_v27 = vpop.eup %282 }
 0x1c8   :  { %v198_v28 = vadd.f32 1.0, %v283_v27 }
 0x1ca   :  { %284 = vlog2.f32 %v198_v28 }
 0x1d4   :  { %v285_v29 = vpop.eup %284 }
 0x1d5   :  { %v200_v31 = vmul.f32 0.6931472, %v285_v29 }
 0x1d7   :  { %v201_v32 = vadd.f32 %v200_v31, %v193_v30 }
 0x1d9   :  { %v202_v34 = vmax.f32 %v201_v32, 1e-12 }
 0x1db   :  { %v208_v35 = vmul.f32 %v206_v33, %v202_v34  ;;  %v218_v38 = vsel %vm35_vm1, %v190_v22, %v202_v34 }
 0x1dd   :  { %210 = vrot.lane.b32.xlu0 %v208_v35, %s290_s2 }
 0x24f   :  { %v211_v36 = vpop.permute.xlu0 %210 }
 0x250   :  { %v213_v37 = vadd.f32 %v211_v36, %v190_v22 }
 0x252   :  { %215 = vrot.lane.b32.xlu1 %v213_v37, %s291_s3 }
 0x2c4   :  { %v216_v39 = vpop.permute.xlu1 %215 }
 0x2c5   :  { %v220_v40 = vsel %vm219_vm2, %v218_v38, %v216_v39 }
 0x2c6   :  { %v222_v41 = vsel %vm221_vm3, %v220_v40, 0.0 }
 0x2c7   :  { %223 = vst [vmem:[%s375_s6] sm:$0x3] %v222_v41 }

// kernel: vanilla_vae_forward.9
= control target key start
LH: loop header
LB: loop body
LE: loop exit
PB: predicated region body
PF: predicated region fallthrough
CT: control target
= control target key end

     0   :  { %vm318_vm0 = vcmask 261120   ;;  %s1169_s1 = inlined_call_operand.vmem [shape: bf16[288,128], index: 1, kind: input, shape index: {}]   ;;  %s1170_s0 = inlined_call_operand.vmem [shape: bf16[128,288], index: 0, kind: input, shape index: {}]   ;;  %s1171_s2 = inlined_call_operand.vmem [shape: f32[1,128], index: 2, kind: input, shape index: {}]   ;;  %s1172_s3 = inlined_call_operand.vmem [shape: f32[128,128], index: 3, kind: output, shape index: {}]  }
   0x1   :  { %v814_v0 = vld [vmem:[%s1169_s1 + $0x40] sm:$0xff]   ;;  %v816_v2 = vld [vmem:[%s1169_s1 + $0x48] sm:$0xff]   ;;  %v818_v4 = vld [vmem:[%s1169_s1 + $0x50] sm:$0xff]  }
   0x2   :  { %v815_v1 = vld [vmem:[%s1169_s1] sm:$0xff]   ;;  %704 = vmatprep.subr.bf16.mxu0 %v814_v0  ;;  %798 = vmatprep.subr.bf16.mxu1 %v814_v0  ;;  %v817_v3 = vld [vmem:[%s1169_s1 + $0x8] sm:$0xff]   ;;  %v819_v5 = vld [vmem:[%s1169_s1 + $0x10] sm:$0xff]  }
   0x3   :  { %705 = vmatpush3.bf16.msra.mxu0 %v815_v1  ;;  %806 = vmatpush3.bf16.msra.mxu1 %v815_v1  ;;  %v820_v6 = vld [vmem:[%s1169_s1 + $0x58] sm:$0xff]   ;;  %v822_v8 = vld [vmem:[%s1169_s1 + $0x60] sm:$0xff]   ;;  %v824_v10 = vld [vmem:[%s1169_s1 + $0x68] sm:$0xff]  }
   0x4   :  { %706 = vmatprep.subr.bf16.mxu0 %v816_v2  ;;  %799 = vmatprep.subr.bf16.mxu1 %v816_v2  ;;  %v821_v7 = vld [vmem:[%s1169_s1 + $0x18] sm:$0xff]   ;;  %v823_v9 = vld [vmem:[%s1169_s1 + $0x20] sm:$0xff]   ;;  %v825_v13 = vld [vmem:[%s1169_s1 + $0x28] sm:$0xff]  }
   0x5   :  { %v832_v11 = vld [vmem:[%s1170_s0 + $0x4] ss:$12 sps:$4 sm:$0xff]   ;;  %v835_v12 = vld [vmem:[%s1170_s0 + $0x94] ss:$12 sps:$4 sm:$0xff]   ;;  %v828_v16 = vld [vmem:[%s1169_s1 + $0x78] sm:$0xff]  }
   0x6   :  { %v826_v14 = vld [vmem:[%s1169_s1 + $0x70] sm:$0xff]   ;;  %375 = vmatprep.mubr.bf16.mxu0 %v832_v11  ;;  %423 = vmatprep.mubr.bf16.mxu1 %v835_v12  ;;  %v829_v17 = vld [vmem:[%s1169_s1 + $0x38] sm:$0xff]   ;;  %v830_v18 = vld [vmem:[%s1170_s0] ss:$12 sps:$4 sm:$0xff]  }
   0x7   :  { %707 = vmatpush3.bf16.msra.mxu0 %v817_v3  ;;  %807 = vmatpush3.bf16.msra.mxu1 %v817_v3  ;;  %v827_v15 = vld [vmem:[%s1169_s1 + $0x30] sm:$0xff]   ;;  %v836_v19 = vld [vmem:[%s1169_s1 + $0x80] sm:$0xff]   ;;  %v837_v21 = vld [vmem:[%s1170_s0 + $0x1c] ss:$12 sps:$4 sm:$0xff]  }
   0x8   :  { %708 = vmatprep.subr.bf16.mxu0 %v818_v4  ;;  %800 = vmatprep.subr.bf16.mxu1 %v818_v4  ;;  %v833_v20 = vld [vmem:[%s1170_s0 + $0x90] ss:$12 sps:$4 sm:$0xff]   ;;  %v839_v22 = vld [vmem:[%s1170_s0 + $0xac] ss:$12 sps:$4 sm:$0xff]   ;;  %v842_v25 = vld [vmem:[%s1170_s0 + $0xa8] ss:$12 sps:$4 sm:$0xff]  }
   0x9   :  { %v843_v23 = vld [vmem:[%s1169_s1 + $0x88] sm:$0xff]   ;;  %v841_v24 = vld [vmem:[%s1170_s0 + $0x18] ss:$12 sps:$4 sm:$0xff]   ;;  %v844_v26 = vld [vmem:[%s1170_s0 + $0x34] ss:$12 sps:$4 sm:$0xff]  }
   0xa   :  { %v846_v27 = vld [vmem:[%s1170_s0 + $0x8] ss:$12 sps:$4 sm:$0xff]   ;;  %v847_v28 = vld [vmem:[%s1170_s0 + $0x30] ss:$12 sps:$4 sm:$0xff]   ;;  %v848_v29 = vld [vmem:[%s1170_s0 + $0x20] ss:$12 sps:$4 sm:$0xff]  }
   0xb   :  { %709 = vmatpush3.bf16.msra.mxu0 %v819_v5  ;;  %808 = vmatpush3.bf16.msra.mxu1 %v819_v5  ;;  %v849_v30 = vld [vmem:[%s1170_s0 + $0x4c] ss:$12 sps:$4 sm:$0xff]   ;;  %v852_v32 = vld [vmem:[%s1170_s0 + $0x48] ss:$12 sps:$4 sm:$0xff]   ;;  %v853_v33 = vld [vmem:[%s1170_s0 + $0x50] ss:$12 sps:$4 sm:$0xff]  }
   0xc   :  { %710 = vmatprep.subr.bf16.mxu0 %v820_v6  ;;  %801 = vmatprep.subr.bf16.mxu1 %v820_v6  ;;  %v851_v31 = vld [vmem:[%s1170_s0 + $0x38] ss:$12 sps:$4 sm:$0xff]   ;;  %v856_v35 = vld [vmem:[%s1170_s0 + $0x68] ss:$12 sps:$4 sm:$0xff]   ;;  %v857_v36 = vld [vmem:[%s1170_s0 + $0x60] ss:$12 sps:$4 sm:$0xff]  }
   0xd   :  { %v854_v34 = vld [vmem:[%s1170_s0 + $0x64] ss:$12 sps:$4 sm:$0xff]   ;;  %v858_v37 = vld [vmem:[%s1170_s0 + $0x80] ss:$12 sps:$4 sm:$0xff]   ;;  %v859_v38 = vld [vmem:[%s1170_s0 + $0x7c] ss:$12 sps:$4 sm:$0xff]  }
   0xe   :  { %v861_v39 = vld [vmem:[%s1170_s0 + $0x98] ss:$12 sps:$4 sm:$0xff]   ;;  %v863_v41 = vld [vmem:[%s1170_s0 + $0xb0] ss:$12 sps:$4 sm:$0xff]   ;;  %v1093_v2 = vld [vmem:[%s1171_s2] ss:$0 sm:$0xff] }
   0xf   :  { %711 = vmatpush3.bf16.msra.mxu0 %v821_v7  ;;  %809 = vmatpush3.bf16.msra.mxu1 %v821_v7  ;;  %v862_v40 = vld [vmem:[%s1170_s0 + $0x78] ss:$12 sps:$4 sm:$0xff]  }
  0x10   :  { %712 = vmatprep.subr.bf16.mxu0 %v822_v8  ;;  %802 = vmatprep.subr.bf16.mxu1 %v822_v8 }
  0x13   :  { %713 = vmatpush3.bf16.msra.mxu0 %v823_v9  ;;  %810 = vmatpush3.bf16.msra.mxu1 %v823_v9 }
  0x14   :  { %714 = vmatprep.subr.bf16.mxu0 %v824_v10  ;;  %803 = vmatprep.subr.bf16.mxu1 %v824_v10 }
  0x17   :  { %715 = vmatpush3.bf16.msra.mxu0 %v825_v13  ;;  %811 = vmatpush3.bf16.msra.mxu1 %v825_v13 }
  0x18   :  { %716 = vmatprep.subr.bf16.mxu0 %v826_v14  ;;  %804 = vmatprep.subr.bf16.mxu1 %v826_v14 }
  0x1b   :  { %717 = vmatpush3.bf16.msra.mxu0 %v827_v15  ;;  %812 = vmatpush3.bf16.msra.mxu1 %v827_v15 }
  0x1c   :  { %718 = vmatprep.subr.bf16.mxu0 %v828_v16  ;;  %805 = vmatprep.subr.bf16.mxu1 %v828_v16 }
  0x1f   :  { %719 = vmatpush3.bf16.msra.mxu0 %v829_v17  ;;  %813 = vmatpush3.bf16.msra.mxu1 %v829_v17 }
  0x20   :  { %778 = vmatprep.subr.bf16.mxu1 %v836_v19 }
  0x22   :  { %376 = vmatmul.mubr.bf16.vlgmr.msra.gmra.mrb[0].mxu0 %v830_v18  ;;  %424 = vmatmul.mubr.bf16.vlgmr.msra.gmra.mrb[0].mxu1 %v833_v20 }
  0x23   :  { %779 = vmatpush3.bf16.msra.mxu1 %v836_v19  ;;  %383 = vmatprep.mubr.bf16.mxu0 %v837_v21 }
  0x24   :  { %431 = vmatprep.mubr.bf16.mxu1 %v839_v22  ;;  %780 = vmatprep.subr.bf16.mxu1 %v843_v23 }
  0x27   :  { %781 = vmatpush3.bf16.msra.mxu1 %v843_v23 }
  0x2a   :  { %384 = vmatmul.mubr.bf16.gmra.mrb[4].mxu0 %v841_v24  ;;  %432 = vmatmul.mubr.bf16.gmra.mrb[4].mxu1 %v842_v25 }
  0x2b   :  { %391 = vmatprep.mubr.bf16.mxu0 %v844_v26  ;;  %782 = vmatprep.mubr.msk.bf16.mxu1 %vm318_vm0, %v846_v27 }
  0x32   :  { %392 = vmatmul.mubr.bf16.gmra.mrb[8].mxu0 %v847_v28  ;;  %783 = vmatmul.mubr.msk.bf16.vlgmr.msra.gmra.mrb[8].mxu1 %vm318_vm0, %v848_v29 }
  0x33   :  { %399 = vmatprep.mubr.bf16.mxu0 %v849_v30  ;;  %786 = vmatprep.mubr.msk.bf16.mxu1 %vm318_vm0, %v851_v31 }
  0x3a   :  { %400 = vmatmul.mubr.bf16.gmra.mrb[12].mxu0 %v852_v32  ;;  %787 = vmatmul.mubr.msk.bf16.gmra.mrb[12].mxu1 %vm318_vm0, %v853_v33 }
  0x3b   :  { %407 = vmatprep.mubr.bf16.mxu0 %v854_v34  ;;  %790 = vmatprep.mubr.msk.bf16.mxu1 %vm318_vm0, %v856_v35 }
  0x42   :  { %408 = vmatmul.mubr.bf16.gmra.mrb[16].mxu0 %v857_v36  ;;  %791 = vmatmul.mubr.msk.bf16.gmra.mrb[16].mxu1 %vm318_vm0, %v858_v37 }
  0x43   :  { %415 = vmatprep.mubr.bf16.mxu0 %v859_v38  ;;  %794 = vmatprep.mubr.msk.bf16.mxu1 %vm318_vm0, %v861_v39 }
  0x4a   :  { %416 = vmatmul.mubr.bf16.gmra.mrb[20].mxu0 %v862_v40  ;;  %795 = vmatmul.mubr.msk.bf16.gmra.mrb[20].mxu1 %vm318_vm0, %v863_v41 }
  0xf5   :  { %v720_v42 = vpop.f32.mrb[0].mxu0  ;;  %v756_v43 = vpop.f32.mrb[0].mxu1 }
  0xf6   :  { %v721_v44 = vpop.f32.mrb[1].mxu0  ;;  %v757_v45 = vpop.f32.mrb[1].mxu1 }
  0xf7   :  { %v722_v46 = vadd.f32 %v721_v44, %v720_v42  ;;  %v723_v47 = vpop.f32.mrb[2].mxu0  ;;  %v1082_v48 = vadd.f32 %v757_v45, %v756_v43  ;;  %v759_v49 = vpop.f32.mrb[2].mxu1 }
  0xf8   :  { %v724_v50 = vpop.f32.mrb[3].mxu0  ;;  %v760_v51 = vpop.f32.mrb[3].mxu1 }
  0xf9   :  { %v725_v52 = vadd.f32 %v724_v50, %v723_v47  ;;  %v1084_v53 = vadd.f32 %v760_v51, %v759_v49  ;;  %v378_v6 = vadd.f32 %v722_v46, %v1093_v2 }
  0xfb   :  { %v381_v15 = vadd.f32 %v725_v52, %v1093_v2 }
  0xfd   :  { %v726_v54 = vpop.f32.mrb[4].mxu0  ;;  %v762_v55 = vpop.f32.mrb[4].mxu1 }
  0xfe   :  { %v727_v56 = vpop.f32.mrb[5].mxu0  ;;  %v763_v57 = vpop.f32.mrb[5].mxu1 }
  0xff   :  { %v728_v58 = vadd.f32 %v727_v56, %v726_v54  ;;  %v729_v59 = vpop.f32.mrb[6].mxu0  ;;  %v1086_v60 = vadd.f32 %v763_v57, %v762_v55  ;;  %v765_v61 = vpop.f32.mrb[6].mxu1 }
 0x100   :  { %v730_v62 = vpop.f32.mrb[7].mxu0  ;;  %v766_v63 = vpop.f32.mrb[7].mxu1 }
 0x101   :  { %v731_v0 = vadd.f32 %v730_v62, %v729_v59  ;;  %v1088_v1 = vadd.f32 %v766_v63, %v765_v61  ;;  %v386_v3 = vadd.f32 %v728_v58, %v1093_v2 }
 0x103   :  { %v389_v10 = vadd.f32 %v731_v0, %v1093_v2 }
 0x105   :  { %v732_v4 = vpop.f32.mrb[8].mxu0  ;;  %v784_v5 = vpop.f32.mrb[8].mxu1 }
 0x106   :  { %v483_v7 = vadd.f32 %v784_v5, %v386_v3  ;;  %v733_v8 = vpop.f32.mrb[9].mxu0  ;;  %v474_v9 = vpop.f32.mrb[9].mxu1 }
 0x107   :  { %v734_v11 = vadd.f32 %v733_v8, %v732_v4  ;;  %v475_v12 = vadd.f32 %v474_v9, %v378_v6  ;;  %v735_v13 = vpop.f32.mrb[10].mxu0  ;;  %v785_v14 = vpop.f32.mrb[10].mxu1 }
 0x108   :  { %v539_v16 = vsub.f32 0.0, %v483_v7  ;;  %v486_v17 = vadd.f32 %v785_v14, %v389_v10  ;;  %v736_v18 = vpop.f32.mrb[11].mxu0  ;;  %v477_v19 = vpop.f32.mrb[11].mxu1 }
 0x109   :  { %v537_v20 = vsub.f32 0.0, %v475_v12  ;;  %v737_v21 = vadd.f32 %v736_v18, %v735_v13  ;;  %v478_v22 = vadd.f32 %v477_v19, %v381_v15  ;;  %v394_v31 = vadd.f32 %v734_v11, %v1093_v2 }
 0x10a   :  { %v557_v23 = vmul.f32 1.442695, %v539_v16  ;;  %v540_v24 = vsub.f32 0.0, %v486_v17  ;;  %v434_v17 = vadd.f32 %v1086_v60, %v1093_v2 }
 0x10b   :  { %v553_v25 = vmul.f32 1.442695, %v537_v20  ;;  %v538_v26 = vsub.f32 0.0, %v478_v22  ;;  %v397_v38 = vadd.f32 %v737_v21, %v1093_v2  ;;  %v426_v21 = vadd.f32 %v1082_v48, %v1093_v2 }
 0x10c   :  { %864 = vpow2.f32 %v557_v23  ;;  %v559_v27 = vmul.f32 1.442695, %v540_v24 }
 0x10d   :  { %866 = vpow2.f32 %v553_v25  ;;  %v555_v28 = vmul.f32 1.442695, %v538_v26  ;;  %v738_v29 = vpop.f32.mrb[12].mxu0  ;;  %v788_v30 = vpop.f32.mrb[12].mxu1  ;;  %v437_v26 = vadd.f32 %v1088_v1, %v1093_v2 }
 0x10e   :  { %868 = vpow2.f32 %v559_v27  ;;  %v739_v32 = vpop.f32.mrb[13].mxu0  ;;  %v490_v33 = vpop.f32.mrb[13].mxu1 }
 0x10f   :  { %870 = vpow2.f32 %v555_v28  ;;  %v740_v34 = vadd.f32 %v739_v32, %v738_v29  ;;  %v491_v35 = vadd.f32 %v490_v33, %v394_v31  ;;  %v741_v36 = vpop.f32.mrb[14].mxu0  ;;  %v789_v37 = vpop.f32.mrb[14].mxu1  ;;  %v429_v32 = vadd.f32 %v1084_v53, %v1093_v2 }
 0x110   :  { %v742_v39 = vpop.f32.mrb[15].mxu0  ;;  %v493_v40 = vpop.f32.mrb[15].mxu1 }
 0x111   :  { %v402_v41 = vadd.f32 %v740_v34, %v1093_v2  ;;  %v541_v42 = vsub.f32 0.0, %v491_v35  ;;  %v743_v43 = vadd.f32 %v742_v39, %v741_v36  ;;  %v494_v44 = vadd.f32 %v493_v40, %v397_v38 }
 0x113   :  { %v499_v45 = vadd.f32 %v788_v30, %v402_v41  ;;  %v561_v46 = vmul.f32 1.442695, %v541_v42  ;;  %v405_v47 = vadd.f32 %v743_v43, %v1093_v2  ;;  %v542_v49 = vsub.f32 0.0, %v494_v44 }
 0x115   :  { %v543_v50 = vsub.f32 0.0, %v499_v45  ;;  %872 = vpow2.f32 %v561_v46  ;;  %v502_v51 = vadd.f32 %v789_v37, %v405_v47  ;;  %v563_v52 = vmul.f32 1.442695, %v542_v49  ;;  %v744_v54 = vpop.f32.mrb[16].mxu0  ;;  %v1103_v55 = vpop.f32.mrb[16].mxu1 }
 0x116   :  { %v865_v56 = vpop.eup %864  ;;  %v745_v57 = vpop.f32.mrb[17].mxu0 }
 0x117   :  { %v506_v58 = vpop.f32.mrb[17].mxu1  ;;  %v867_v59 = vpop.eup %866  ;;  %v587_v61 = vadd.f32 1.0, %v865_v56  ;;  %v544_v62 = vsub.f32 0.0, %v502_v51  ;;  %874 = vpow2.f32 %v563_v52  ;;  %v746_v5 = vadd.f32 %v745_v57, %v744_v54 }
 0x118   :  { %v747_v63 = vpop.f32.mrb[18].mxu0  ;;  %v1105_v0 = vpop.f32.mrb[18].mxu1  ;;  %v585_v4 = vadd.f32 1.0, %v867_v59  ;;  %v565_v10 = vmul.f32 1.442695, %v543_v50 }
 0x119   :  { %v869_v3 = vpop.eup %868  ;;  %v748_v6 = vpop.f32.mrb[19].mxu0  ;;  %876 = vrcp.f32 %v587_v61  ;;  %v567_v13 = vmul.f32 1.442695, %v544_v62  ;;  %v410_v14 = vadd.f32 %v746_v5, %v1093_v2 }
 0x11a   :  { %v509_v7 = vpop.f32.mrb[19].mxu1  ;;  %v871_v8 = vpop.eup %870  ;;  %v588_v9 = vadd.f32 1.0, %v869_v3  ;;  %v749_v11 = vadd.f32 %v748_v6, %v747_v63  ;;  %878 = vrcp.f32 %v585_v4 }
 0x11b   :  { %v586_v12 = vadd.f32 1.0, %v871_v8  ;;  %v507_v16 = vadd.f32 %v506_v58, %v410_v14 }
 0x11c   :  { %880 = vrcp.f32 %v588_v9  ;;  %v413_v15 = vadd.f32 %v749_v11, %v1093_v2 }
 0x11d   :  { %882 = vrcp.f32 %v586_v12  ;;  %v750_v19 = vpop.f32.mrb[20].mxu0  ;;  %v796_v20 = vpop.f32.mrb[20].mxu1  ;;  %v545_v22 = vsub.f32 0.0, %v507_v16 }
 0x11e   :  { %884 = vpow2.f32 %v565_v10  ;;  %v510_v18 = vadd.f32 %v509_v7, %v413_v15  ;;  %v531_v23 = vadd.f32 %v796_v20, %v434_v17  ;;  %v751_v24 = vpop.f32.mrb[21].mxu0  ;;  %v522_v25 = vpop.f32.mrb[21].mxu1 }
 0x11f   :  { %886 = vpow2.f32 %v567_v13  ;;  %v873_v27 = vpop.eup %872  ;;  %v752_v29 = vadd.f32 %v751_v24, %v750_v19  ;;  %v523_v30 = vadd.f32 %v522_v25, %v426_v21  ;;  %v753_v60 = vpop.f32.mrb[22].mxu0  ;;  %v569_v34 = vmul.f32 1.442695, %v545_v22 }
 0x120   :  { %v546_v28 = vsub.f32 0.0, %v510_v18  ;;  %v797_v31 = vpop.f32.mrb[22].mxu1  ;;  %v589_v33 = vadd.f32 1.0, %v873_v27  ;;  %v551_v48 = vsub.f32 0.0, %v531_v23  ;;  %v754_v36 = vpop.f32.mrb[23].mxu0 }
 0x121   :  { %v534_v35 = vadd.f32 %v797_v31, %v437_v26  ;;  %v525_v37 = vpop.f32.mrb[23].mxu1  ;;  %v875_v38 = vpop.eup %874  ;;  %v418_v40 = vadd.f32 %v752_v29, %v1093_v2  ;;  %v549_v1 = vsub.f32 0.0, %v523_v30  ;;  %v755_v41 = vadd.f32 %v754_v36, %v753_v60 }
 0x122   :  { %v571_v39 = vmul.f32 1.442695, %v546_v28  ;;  %888 = vrcp.f32 %v589_v33  ;;  %v590_v42 = vadd.f32 1.0, %v875_v38  ;;  %v581_v43 = vmul.f32 1.442695, %v551_v48 }
 0x123   :  { %v552_v44 = vsub.f32 0.0, %v534_v35  ;;  %v877_v45 = vpop.eup %876  ;;  %890 = vpow2.f32 %v569_v34  ;;  %v515_v53 = vadd.f32 %v1103_v55, %v418_v40  ;;  %v577_v46 = vmul.f32 1.442695, %v549_v1 }
 0x124   :  { %v421_v47 = vadd.f32 %v755_v41, %v1093_v2  ;;  %v879_v49 = vpop.eup %878  ;;  %635 = vst [vmem:[%s1172_s3 + $0x10] sm:$0xff] %v877_v45  ;;  %892 = vrcp.f32 %v590_v42  ;;  %v526_v51 = vadd.f32 %v525_v37, %v429_v32 }
 0x125   :  { %v583_v50 = vmul.f32 1.442695, %v552_v44  ;;  %633 = vst [vmem:[%s1172_s3] sm:$0xff] %v879_v49  ;;  %894 = vpow2.f32 %v571_v39  ;;  %v547_v54 = vsub.f32 0.0, %v515_v53 }
 0x126   :  { %v881_v52 = vpop.eup %880  ;;  %v518_v55 = vadd.f32 %v1105_v0, %v421_v47  ;;  %896 = vpow2.f32 %v581_v43  ;;  %v550_v2 = vsub.f32 0.0, %v526_v51 }
 0x127   :  { %v883_v56 = vpop.eup %882  ;;  %636 = vst [vmem:[%s1172_s3 + $0x18] sm:$0xff] %v881_v52  ;;  %v573_v58 = vmul.f32 1.442695, %v547_v54  ;;  %898 = vpow2.f32 %v577_v46 }
 0x128   :  { %v885_v57 = vpop.eup %884  ;;  %634 = vst [vmem:[%s1172_s3 + $0x8] sm:$0xff] %v883_v56  ;;  %v548_v59 = vsub.f32 0.0, %v518_v55  ;;  %900 = vpow2.f32 %v583_v50  ;;  %v579_v3 = vmul.f32 1.442695, %v550_v2 }
 0x129   :  { %v887_v61 = vpop.eup %886  ;;  %v591_v62 = vadd.f32 1.0, %v885_v57  ;;  %902 = vpow2.f32 %v573_v58 }
 0x12a   :  { %v592_v63 = vadd.f32 1.0, %v887_v61  ;;  %v575_v0 = vmul.f32 1.442695, %v548_v59 }
 0x12b   :  { %904 = vrcp.f32 %v591_v62 }
 0x12c   :  { %906 = vrcp.f32 %v592_v63  ;;  %v889_v4 = vpop.eup %888 }
 0x12d   :  { %908 = vpow2.f32 %v575_v0  ;;  %v891_v5 = vpop.eup %890  ;;  %637 = vst [vmem:[%s1172_s3 + $0x20] sm:$0xff] %v889_v4 }
 0x12e   :  { %910 = vpow2.f32 %v579_v3  ;;  %v893_v6 = vpop.eup %892  ;;  %v593_v7 = vadd.f32 1.0, %v891_v5 }
 0x12f   :  { %v895_v8 = vpop.eup %894  ;;  %638 = vst [vmem:[%s1172_s3 + $0x28] sm:$0xff] %v893_v6 }
 0x130   :  { %v897_v9 = vpop.eup %896  ;;  %912 = vrcp.f32 %v593_v7  ;;  %v594_v10 = vadd.f32 1.0, %v895_v8 }
 0x131   :  { %v899_v11 = vpop.eup %898  ;;  %v599_v12 = vadd.f32 1.0, %v897_v9 }
 0x132   :  { %v901_v13 = vpop.eup %900  ;;  %914 = vrcp.f32 %v594_v10  ;;  %v597_v14 = vadd.f32 1.0, %v899_v11 }
 0x133   :  { %v903_v15 = vpop.eup %902  ;;  %916 = vrcp.f32 %v599_v12  ;;  %v600_v16 = vadd.f32 1.0, %v901_v13 }
 0x134   :  { %v595_v18 = vadd.f32 1.0, %v903_v15  ;;  %918 = vrcp.f32 %v597_v14 }
 0x135   :  { %v905_v17 = vpop.eup %904  ;;  %920 = vrcp.f32 %v600_v16 }
 0x136   :  { %v907_v19 = vpop.eup %906  ;;  %639 = vst [vmem:[%s1172_s3 + $0x30] sm:$0xff] %v905_v17  ;;  %922 = vrcp.f32 %v595_v18 }
 0x137   :  { %v909_v20 = vpop.eup %908  ;;  %640 = vst [vmem:[%s1172_s3 + $0x38] sm:$0xff] %v907_v19 }
 0x138   :  { %v911_v21 = vpop.eup %910  ;;  %v596_v22 = vadd.f32 1.0, %v909_v20 }
 0x139   :  { %v598_v23 = vadd.f32 1.0, %v911_v21 }
 0x13a   :  { %924 = vrcp.f32 %v596_v22  ;;  %v913_v24 = vpop.eup %912 }
 0x13b   :  { %926 = vrcp.f32 %v598_v23  ;;  %641 = vst [vmem:[%s1172_s3 + $0x40] sm:$0xff] %v913_v24 }
 0x13c   :  { %v915_v25 = vpop.eup %914 }
 0x13d   :  { %v917_v26 = vpop.eup %916  ;;  %642 = vst [vmem:[%s1172_s3 + $0x48] sm:$0xff] %v915_v25 }
 0x13e   :  { %v919_v27 = vpop.eup %918  ;;  %647 = vst [vmem:[%s1172_s3 + $0x70] sm:$0xff] %v917_v26 }
 0x13f   :  { %v921_v28 = vpop.eup %920  ;;  %645 = vst [vmem:[%s1172_s3 + $0x60] sm:$0xff] %v919_v27 }
 0x140   :  { %v923_v29 = vpop.eup %922  ;;  %648 = vst [vmem:[%s1172_s3 + $0x78] sm:$0xff] %v921_v28 }
 0x141   :  { %643 = vst [vmem:[%s1172_s3 + $0x50] sm:$0xff] %v923_v29 }
 0x144   :  { %v925_v30 = vpop.eup %924 }
 0x145   :  { %v927_v60 = vpop.eup %926  ;;  %644 = vst [vmem:[%s1172_s3 + $0x58] sm:$0xff] %v925_v30 }
 0x146   :  { %646 = vst [vmem:[%s1172_s3 + $0x68] sm:$0xff] %v927_v60 }

</bundles_post_ra>
